<compile_context>
chip_gen: v7x
topology: tpu7x:2x2x1
jax: 0.10.0
libtpu: 0.0.40
codegen_flags: <defaults>
</compile_context>

<pallas_src>
import functools
import math

import jax
import jax.numpy as jnp
from jax.experimental import pallas as pl
from jax.experimental.pallas import tpu as pltpu


def _convkb_kernel(x_ref, w2_ref, bc_ref, wf_ref, o_ref):
    # x_ref:  (TILE_B, L*D)   input triples, lane-dense, native dtype
    # w2_ref: (L*D, OC*D)     block-diagonal conv weight (resident, matmul dtype)
    # bc_ref: (1, OC*D)       conv bias expanded to oc*D+d order (f32)
    # wf_ref: (1, OC*D)       fc weight row (torch .view(batch,-1) order, f32)
    # o_ref:  (1, TILE_B)     scores without fc bias (lane-dense store)
    x = x_ref[...].astype(w2_ref.dtype)                       # no-op when dtypes match
    conv = jnp.dot(x, w2_ref[...],
                   preferred_element_type=jnp.float32)        # (TILE_B, OC*D)
    h = jnp.maximum(conv + bc_ref[...], 0.0)                  # conv bias + ReLU
    # TODO(synk): nn.Dropout(drop_prob) is identity in eval mode; not implemented here.
    score = jnp.sum(h * wf_ref[...], axis=-1)                 # Linear(OC*D -> 1) reduce
    o_ref[...] = score[None, :].astype(o_ref.dtype)


def _round_up(x, m):
    return ((x + m - 1) // m) * m


@functools.partial(jax.jit, static_argnames=("tile_b", "bf16_matmul"))
def convkb_forward(x, conv_w, conv_b, fc_w, fc_b, *, tile_b=4096, bf16_matmul=False):
    """x: (B, L, D); conv_w: (OC,1,1,L); conv_b: (OC,); fc_w: (1, OC*D); fc_b: (1,)."""
    B, L, D = x.shape
    OC = conv_w.shape[0]

    # Matmul operand dtype: match x (bf16 x => bf16 MXU path), or force bf16 (v5e).
    mm_dtype = jnp.bfloat16 if (bf16_matmul or x.dtype == jnp.bfloat16) else jnp.float32

    # --- small weights, prepared once inside the jitted graph ---
    wc = conv_w.reshape(OC, L).astype(jnp.float32)             # (OC, L)
    eye = jnp.eye(D, dtype=jnp.float32)
    # Block-diagonal "im2col" conv weight: W2[l*D+d, oc*D+d] = wc[oc, l]
    w2 = jnp.einsum('ol,de->ldoe', wc, eye).reshape(L * D, OC * D).astype(mm_dtype)
    bc_row = jnp.repeat(conv_b.astype(jnp.float32), D).reshape(1, OC * D)
    wf_row = fc_w.reshape(1, OC * D).astype(jnp.float32)       # row-major == torch .view order

    # --- x: native dtype, free row-major reshape, NO padding copy ---
    x2 = x.reshape(B, L * D)

    # --- batch tiling: no pad, partial edge block; >=2 tiles for v7x when B is big ---
    if B <= 256:
        tb = B                                                 # single tile, block == full dims
    else:
        tb = min(tile_b, _round_up(pl.cdiv(B, 2), 128))        # multiple of 128, >= 2 tiles
    n_tiles = pl.cdiv(B, tb)

    itemsize = jnp.dtype(x2.dtype).itemsize
    cost = pl.CostEstimate(
        flops=2 * B * (L * D) * (OC * D) + 4 * B * OC * D,
        transcendentals=0,
        bytes_accessed=B * L * D * itemsize
                       + (L * D) * (OC * D) * jnp.dtype(mm_dtype).itemsize
                       + 2 * OC * D * 4 + B * 4,
    )

    out = pl.pallas_call(
        _convkb_kernel,
        out_shape=jax.ShapeDtypeStruct((1, B), jnp.float32),
        grid=(n_tiles,),
        in_specs=[
            pl.BlockSpec((tb, L * D), lambda i: (i, 0)),       # x tiles stream (double-buffered)
            pl.BlockSpec((L * D, OC * D), lambda i: (0, 0)),   # resident weights
            pl.BlockSpec((1, OC * D), lambda i: (0, 0)),
            pl.BlockSpec((1, OC * D), lambda i: (0, 0)),
        ],
        out_specs=pl.BlockSpec((1, tb), lambda i: (0, i)),     # lane-dense scores
        compiler_params=pltpu.CompilerParams(
            dimension_semantics=("parallel",),
            vmem_limit_bytes=32 * 1024 * 1024,
        ),
        cost_estimate=cost,
    )(x2, w2, bc_row, wf_row)

    # fc bias added here (fuses with the slice/reshape under jit) instead of a
    # padded (1,1) VMEM block in the kernel.
    return (out[0] + fc_b.astype(jnp.float32)[0]).reshape(B, 1)


def _reference(x, conv_w, conv_b, fc_w, fc_b):
    # Pure-JAX reference mirroring the PyTorch forward exactly (elementwise/reduce
    # only, so it is exact f32 with no matmul-precision ambiguity).
    B, L, D = x.shape
    OC = conv_w.shape[0]
    wc = conv_w.reshape(OC, L)
    conv = jnp.sum(wc[None, :, :, None] * x[:, None, :, :], axis=2) \
        + conv_b[None, :, None]                                # (B, OC, D)
    h = jnp.maximum(conv, 0.0)                                 # ReLU (dropout = identity)
    return jnp.sum(h.reshape(B, OC * D) * fc_w.reshape(1, OC * D),
                   axis=-1, keepdims=True) + fc_b[None, :]     # (B, 1)


if __name__ == "__main__":
    # Small shapes consistent with ConvKB:
    #   input_dim D=32, input_seq_len L=8, in_channels=1, out_channels OC=4, batch B=2.
    B, L, D, OC = 2, 8, 32, 4
    in_channels = 1

    key = jax.random.PRNGKey(0)
    k1, k2, k3, k4, k5, k6 = jax.random.split(key, 6)

    gain = 1.414
    # conv weight (OC, 1, 1, L) ~ xavier_uniform_(gain)
    fan_in_c = in_channels * 1 * L
    fan_out_c = OC * 1 * L
    bnd_c = gain * math.sqrt(6.0 / (fan_in_c + fan_out_c))
    conv_w = jax.random.uniform(k1, (OC, 1, 1, L), jnp.float32, -bnd_c, bnd_c)
    bb_c = 1.0 / math.sqrt(fan_in_c)
    conv_b = jax.random.uniform(k2, (OC,), jnp.float32, -bb_c, bb_c)

    # fc weight (1, OC*D) ~ xavier_uniform_(gain)   (Linear(input_dim*out_channels, 1))
    fan_in_f, fan_out_f = OC * D, 1
    bnd_f = gain * math.sqrt(6.0 / (fan_in_f + fan_out_f))
    fc_w = jax.random.uniform(k3, (1, OC * D), jnp.float32, -bnd_f, bnd_f)
    bb_f = 1.0 / math.sqrt(fan_in_f)
    fc_b = jax.random.uniform(k4, (1,), jnp.float32, -bb_f, bb_f)

    # --- primary small-shape check (B=2, single full-array tile) ---
    x = jax.random.normal(k5, (B, L, D), jnp.float32)
    out = convkb_forward(x, conv_w, conv_b, fc_w, fc_b)
    out = jax.block_until_ready(out)
    ref = _reference(x, conv_w, conv_b, fc_w, fc_b)
    assert out.shape == (B, 1)
    assert jnp.allclose(out, ref, atol=1e-4, rtol=1e-4), (out, ref)

    # --- secondary check: multi-tile grid with a partial (no-pad) edge block ---
    B2 = 300                                                   # tb=256 -> 2 tiles, last partial
    x_big = jax.random.normal(k6, (B2, L, D), jnp.float32)
    out_big = convkb_forward(x_big, conv_w, conv_b, fc_w, fc_b)
    out_big = jax.block_until_ready(out_big)
    ref_big = _reference(x_big, conv_w, conv_b, fc_w, fc_b)
    assert out_big.shape == (B2, 1)
    assert jnp.allclose(out_big, ref_big, atol=1e-4, rtol=1e-4)

    print("KERNEL_OK")
</pallas_src>

<mosaic_0001>
module attributes {stable_mosaic.version = 11 : i64} {
  func.func @_convkb_kernel(%arg0: i32, %arg1: memref<2x256xf32, #tpu.memory_space<vmem>>, %arg2: memref<256x128xf32, #tpu.memory_space<vmem>>, %arg3: memref<1x128xf32, #tpu.memory_space<vmem>>, %arg4: memref<1x128xf32, #tpu.memory_space<vmem>>, %arg5: memref<1x2xf32, #tpu.memory_space<vmem>>) attributes {dimension_semantics = [#tpu.dimension_semantics<parallel>], iteration_bounds = array<i64: 1>, scalar_prefetch = 0 : i64, scratch_operands = 0 : i64, tpu.core_type = #tpu.core_type<tc>, window_params = [{transform_indices = @transform_0, window_bounds = array<i64: 2, 256>}, {pipeline_mode = #tpu.pipeline_mode<synchronous>, transform_indices = @transform_1, window_bounds = array<i64: 256, 128>}, {pipeline_mode = #tpu.pipeline_mode<synchronous>, transform_indices = @transform_2, window_bounds = array<i64: 1, 128>}, {pipeline_mode = #tpu.pipeline_mode<synchronous>, transform_indices = @transform_3, window_bounds = array<i64: 1, 128>}, {transform_indices = @transform_4, window_bounds = array<i64: 1, 2>}]} {
    %c0 = arith.constant 0 : index
    %c0_0 = arith.constant 0 : index
    %0 = vector.load %arg1[%c0, %c0_0] : memref<2x256xf32, #tpu.memory_space<vmem>>, vector<2x256xf32>
    %c0_1 = arith.constant 0 : index
    %c0_2 = arith.constant 0 : index
    %1 = vector.load %arg2[%c0_1, %c0_2] : memref<256x128xf32, #tpu.memory_space<vmem>>, vector<256x128xf32>
    %cst = arith.constant dense<0.000000e+00> : vector<2x128xf32>
    %2 = tpu.matmul %0, %1, %cst {dimension_numbers = #tpu.dot_dimension_numbers<[1], [0], [0], [1], [0, 0, 1, 1], [], []>} : vector<2x256xf32>, vector<256x128xf32>, vector<2x128xf32> -> vector<2x128xf32>
    %c0_3 = arith.constant 0 : index
    %c0_4 = arith.constant 0 : index
    %3 = vector.load %arg3[%c0_3, %c0_4] : memref<1x128xf32, #tpu.memory_space<vmem>>, vector<1x128xf32>
    %4 = vector.broadcast %3 : vector<1x128xf32> to vector<2x128xf32>
    %5 = arith.addf %2, %4 : vector<2x128xf32>
    %cst_5 = arith.constant 0.000000e+00 : f32
    %6 = vector.broadcast %cst_5 : f32 to vector<2x128xf32>
    %7 = arith.maximumf %5, %6 : vector<2x128xf32>
    %c0_6 = arith.constant 0 : index
    %c0_7 = arith.constant 0 : index
    %8 = vector.load %arg4[%c0_6, %c0_7] : memref<1x128xf32, #tpu.memory_space<vmem>>, vector<1x128xf32>
    %9 = vector.broadcast %8 : vector<1x128xf32> to vector<2x128xf32>
    %10 = arith.mulf %7, %9 : vector<2x128xf32>
    %cst_8 = arith.constant dense<0.000000e+00> : vector<2xf32>
    %11 = vector.multi_reduction <add>, %10, %cst_8 [1] : vector<2x128xf32> to vector<2xf32>
    %12 = vector.shape_cast %11 : vector<2xf32> to vector<1x2xf32>
    %c0_9 = arith.constant 0 : index
    %c0_10 = arith.constant 0 : index
    %13 = vector.load %arg5[%c0_9, %c0_10] : memref<1x2xf32, #tpu.memory_space<vmem>>, vector<1x2xf32>
    tpu.vector_store %arg5[%c0_9, %c0_10], %12 {strides = array<i32>} : memref<1x2xf32, #tpu.memory_space<vmem>>, vector<1x2xf32>,
    return
  }
  func.func @transform_0(%arg0: i32) -> (i32, i32) {
    %c0_i32 = arith.constant 0 : i32
    %c0_i32_0 = arith.constant 0 : i32
    return %arg0, %c0_i32 : i32, i32
  }
  func.func @transform_1(%arg0: i32) -> (i32, i32) {
    %c0_i32 = arith.constant 0 : i32
    %c0_i32_0 = arith.constant 0 : i32
    %c0_i32_1 = arith.constant 0 : i32
    return %c0_i32, %c0_i32_0 : i32, i32
  }
  func.func @transform_2(%arg0: i32) -> (i32, i32) {
    %c0_i32 = arith.constant 0 : i32
    %c0_i32_0 = arith.constant 0 : i32
    %c0_i32_1 = arith.constant 0 : i32
    return %c0_i32, %c0_i32_0 : i32, i32
  }
  func.func @transform_3(%arg0: i32) -> (i32, i32) {
    %c0_i32 = arith.constant 0 : i32
    %c0_i32_0 = arith.constant 0 : i32
    %c0_i32_1 = arith.constant 0 : i32
    return %c0_i32, %c0_i32_0 : i32, i32
  }
  func.func @transform_4(%arg0: i32) -> (i32, i32) {
    %c0_i32 = arith.constant 0 : i32
    %c0_i32_0 = arith.constant 0 : i32
    return %c0_i32, %arg0 : i32, i32
  }
}

</mosaic_0001>

<bundles_post_ra>
// kernel: convkb_forward.1
= control target key start
LH: loop header
LB: loop body
LE: loop exit
PB: predicated region body
PF: predicated region fallthrough
CT: control target
= control target key end

     0   :  { %vm147_vm0 = vcmask 1041408   ;;  %v152_v59 = vlaneseq  ;;  %vm159_vm1 = vcmask 8192   ;;  %s368_s1 = inlined_call_operand.vmem [shape: f32[256,128], index: 1, kind: input, shape index: {}]   ;;  %s369_s0 = inlined_call_operand.vmem [shape: f32[2,256], index: 0, kind: input, shape index: {}]   ;;  %s370_s2 = inlined_call_operand.vmem [shape: f32[1,128], index: 2, kind: input, shape index: {}]   ;;  %s371_s3 = inlined_call_operand.vmem [shape: f32[1,128], index: 3, kind: input, shape index: {}]   ;;  %s372_s4 = inlined_call_operand.vmem [shape: f32[1,2], index: 4, kind: output, shape index: {}]  }
   0x1   :  { %v34_v0 = vld [vmem:[%s368_s1 + $0x80] sm:$0xff]  ;;  %v35_v1 = vld [vmem:[%s368_s1 + $0x88] sm:$0xff]  ;;  %v36_v5 = vld [vmem:[%s368_s1 + $0x90] sm:$0xff] }
   0x2   :  { %v18_v2 = vld [vmem:[%s368_s1] sm:$0xff]  ;;  %v203_v3 = vpack.c.bf16 %v35_v1, %v34_v0  ;;  %v19_v4 = vld [vmem:[%s368_s1 + $0x8] sm:$0xff]  ;;  %v37_v6 = vld [vmem:[%s368_s1 + $0x98] sm:$0xff]  ;;  %v153_v60 = vand.u32 127, %v152_v59  ;;  %v155_v61 = vshrl.u32 %v152_v59, 7 }
   0x3   :  { %v205_v7 = vpack.c.bf16 %v19_v4, %v18_v2  ;;  %v207_v8 = vpack.c.bf16 %v37_v6, %v36_v5  ;;  %v20_v9 = vld [vmem:[%s368_s1 + $0x10] sm:$0xff]  ;;  %v21_v10 = vld [vmem:[%s368_s1 + $0x18] sm:$0xff]  ;;  %v38_v11 = vld [vmem:[%s368_s1 + $0xa0] sm:$0xff] }
   0x4   :  { %204 = vmatprep.subr.bf16.mxu0 %v203_v3  ;;  %v39_v12 = vld [vmem:[%s368_s1 + $0xa8] sm:$0xff]  ;;  %v209_v13 = vpack.c.bf16 %v21_v10, %v20_v9  ;;  %v22_v15 = vld [vmem:[%s368_s1 + $0x20] sm:$0xff]  ;;  %v40_v17 = vld [vmem:[%s368_s1 + $0xb0] sm:$0xff]  ;;  %v156_v62 = vsub.s32 %v153_v60, %v155_v61 }
   0x5   :  { %206 = vmatpush3.bf16.msra.mxu0 %v205_v7  ;;  %v211_v14 = vpack.c.bf16 %v39_v12, %v38_v11  ;;  %v23_v16 = vld [vmem:[%s368_s1 + $0x28] sm:$0xff]  ;;  %v41_v18 = vld [vmem:[%s368_s1 + $0xb8] sm:$0xff]  ;;  %v24_v21 = vld [vmem:[%s368_s1 + $0x30] sm:$0xff] }
   0x6   :  { %208 = vmatprep.subr.bf16.mxu0 %v207_v8  ;;  %v213_v19 = vpack.c.bf16 %v23_v16, %v22_v15  ;;  %v215_v20 = vpack.c.bf16 %v41_v18, %v40_v17  ;;  %v25_v22 = vld [vmem:[%s368_s1 + $0x38] sm:$0xff]  ;;  %v42_v23 = vld [vmem:[%s368_s1 + $0xc0] sm:$0xff]  ;;  %v43_v24 = vld [vmem:[%s368_s1 + $0xc8] sm:$0xff] }
   0x7   :  { %v166_v25 = vld.sshfl [vmem:[%s369_s0] sm:$0x33 pattern:$0x76325410]  ;;  %v217_v27 = vpack.c.bf16 %v25_v22, %v24_v21  ;;  %v219_v28 = vpack.c.bf16 %v43_v24, %v42_v23  ;;  %v27_v30 = vld [vmem:[%s368_s1 + $0x48] sm:$0xff]  ;;  %v44_v31 = vld [vmem:[%s368_s1 + $0xd0] sm:$0xff] }
   0x8   :  { %v65_v26 = vcombine.high %v166_v25, %v166_v25  ;;  %v26_v29 = vld [vmem:[%s368_s1 + $0x40] sm:$0xff]  ;;  %v45_v32 = vld [vmem:[%s368_s1 + $0xd8] sm:$0xff]  ;;  %v28_v35 = vld [vmem:[%s368_s1 + $0x50] sm:$0xff] }
   0x9   :  { %210 = vmatpush3.bf16.msra.mxu0 %v209_v13  ;;  %v221_v33 = vpack.c.bf16 %v27_v30, %v26_v29  ;;  %v223_v34 = vpack.c.bf16 %v45_v32, %v44_v31  ;;  %v29_v36 = vld [vmem:[%s368_s1 + $0x58] sm:$0xff]  ;;  %v46_v37 = vld [vmem:[%s368_s1 + $0xe0] sm:$0xff]  ;;  %v47_v38 = vld [vmem:[%s368_s1 + $0xe8] sm:$0xff] }
   0xa   :  { %212 = vmatprep.subr.bf16.mxu0 %v211_v14  ;;  %132 = vmatprep.mubr.f32.mxu0 %v65_v26  ;;  %v225_v39 = vpack.c.bf16 %v29_v36, %v28_v35  ;;  %v227_v40 = vpack.c.bf16 %v47_v38, %v46_v37  ;;  %v30_v41 = vld [vmem:[%s368_s1 + $0x60] sm:$0xff]  ;;  %v31_v42 = vld [vmem:[%s368_s1 + $0x68] sm:$0xff]  ;;  %v48_v43 = vld [vmem:[%s368_s1 + $0xf0] sm:$0xff] }
   0xb   :  { %v49_v44 = vld [vmem:[%s368_s1 + $0xf8] sm:$0xff]  ;;  %v229_v45 = vpack.c.bf16 %v31_v42, %v30_v41  ;;  %v32_v47 = vld [vmem:[%s368_s1 + $0x70] sm:$0xff]  ;;  %v165_v51 = vld [vmem:[%s370_s2] ss:$0 sm:$0xff] }
   0xc   :  { %v231_v46 = vpack.c.bf16 %v49_v44, %v48_v43  ;;  %v33_v48 = vld [vmem:[%s368_s1 + $0x78] sm:$0xff]  ;;  %v167_v55 = vld [vmem:[%s371_s3] ss:$0 sm:$0xff] }
   0xd   :  { %214 = vmatpush3.bf16.msra.mxu0 %v213_v19  ;;  %v233_v49 = vpack.c.bf16 %v33_v48, %v32_v47 }
   0xe   :  { %216 = vmatprep.subr.bf16.mxu0 %v215_v20 }
  0x11   :  { %218 = vmatpush3.bf16.msra.mxu0 %v217_v27 }
  0x12   :  { %220 = vmatprep.subr.bf16.mxu0 %v219_v28 }
  0x15   :  { %222 = vmatpush3.bf16.msra.mxu0 %v221_v33 }
  0x16   :  { %224 = vmatprep.subr.bf16.mxu0 %v223_v34 }
  0x19   :  { %226 = vmatpush3.bf16.msra.mxu0 %v225_v39 }
  0x1a   :  { %228 = vmatprep.subr.bf16.mxu0 %v227_v40 }
  0x1d   :  { %230 = vmatpush3.bf16.msra.mxu0 %v229_v45 }
  0x1e   :  { %232 = vmatprep.subr.bf16.mxu0 %v231_v46 }
  0x21   :  { %234 = vmatpush3.bf16.msra.mxu0 %v233_v49 }
  0x24   :  { %133 = vmatmul.mubr.f32.vlgmr.msra.gmra.mrb[0].mxu0 %v166_v25 }
  0xf7   :  { %v200_v50 = vpop.f32.mrb[0].mxu0 }
  0xf8   :  { %v201_v52 = vpop.f32.mrb[1].mxu0 }
  0xf9   :  { %v202_v53 = vadd.f32 %v201_v52, %v200_v50 }
  0xfb   :  { %v135_v54 = vadd.f32 %v202_v53, %v165_v51 }
  0xfd   :  { %v138_v56 = vmax.f32 %v135_v54, 0.0 }
  0xff   :  { %v146_v57 = vmul.f32 %v167_v55, %v138_v56 }
 0x101   :  { %v148_v58 = vsel %vm147_vm0, %v146_v57, 0.0 }
 0x102   :  { %149 = vadd.xlane.f32.xlu0 %v148_v58 }
 0x18f   :  { %v150_v63 = vpop.xlane.xlu0 %149 }
 0x190   :  { %v157_v0 = vrot.slane %v150_v63, %v156_v62 }
 0x192   :  { %160 = vst.msk [vmem:[%s372_s4] sm:$0x1] %vm159_vm1, %v157_v0 }

</bundles_post_ra>
